<compile_context>
chip_gen: v5e
topology: v5e:2x2
jax: 0.10.0
libtpu: 0.0.40
codegen_flags: <defaults>
</compile_context>

<pallas_src>
import jax
import jax.numpy as jnp
from jax import lax
from jax.experimental import pallas as pl
from jax.experimental.pallas import tpu as pltpu

LANE = 128


def _min_value(dtype):
    dtype = jnp.dtype(dtype)
    if jnp.issubdtype(dtype, jnp.floating):
        return jnp.asarray(-jnp.inf, dtype)
    return jnp.asarray(jnp.iinfo(dtype).min, dtype)


def _make_ca_kernel(HW, hw_tile, mask_needed):
    n_chunks = hw_tile // LANE

    def ca_kernel(x_ref, w1t_ref, w2t_ref, o_ref, run_ref):
        # x_ref:   (Bt, C, hw_tile)  spatial tile for Bt batch rows
        # w1t_ref: (C, Ch)           fc1 weight, pre-transposed
        # w2t_ref: (Ch, C)           fc2 weight, pre-transposed
        # o_ref:   (1, Bt, C)        lane-dense attention weights
        # run_ref: (Bt, C, LANE)     running-max slab (VMEM scratch, x dtype)
        h = pl.program_id(1)

        @pl.when(h == 0)
        def _init():
            run_ref[...] = jnp.full(run_ref.shape, _min_value(run_ref.dtype),
                                    dtype=run_ref.dtype)

        if mask_needed:
            neg_fill = _min_value(x_ref.dtype)
            lane_iota = lax.broadcasted_iota(jnp.int32, (1, 1, LANE), 2)

        # Fold the spatial axis 128 lanes at a time with elementwise maxima
        # (VPU); a single cross-lane (XLU) reduce remains at the final step.
        def body(j, run):
            start = pl.multiple_of(j * LANE, LANE)
            chunk = x_ref[:, :, pl.ds(start, LANE)]
            if mask_needed:
                gidx = h * hw_tile + j * LANE + lane_iota
                chunk = jnp.where(gidx < HW, chunk, neg_fill)
            return jnp.maximum(run, chunk)

        run_ref[...] = lax.fori_loop(0, n_chunks, body, run_ref[...])

        @pl.when(h == pl.num_programs(1) - 1)
        def _finalize():
            pooled = jnp.max(run_ref[...], axis=-1).astype(jnp.float32)  # (Bt, C)
            hid = jnp.dot(pooled, w1t_ref[...],
                          preferred_element_type=jnp.float32)            # (Bt, Ch)
            hid = jnp.maximum(hid, 0.0)                                  # ReLU
            out = jnp.dot(hid, w2t_ref[...],
                          preferred_element_type=jnp.float32)            # (Bt, C)
            o_ref[0] = jax.nn.sigmoid(out).astype(o_ref.dtype)           # Sigmoid

    return ca_kernel


def ca_forward(x_nchw, w1, w2):
    """Channel-attention forward.  x_nchw: (N, C, H, W).
    w1: (C//16, C) fc1 weight, w2: (C, C//16) fc2 weight (1x1 convs, no bias).
    Returns (N, C, 1, 1)."""
    N, C, H, W = x_nchw.shape
    Ch = w1.shape[0]
    HW = H * W
    dtype = x_nchw.dtype
    itemsize = jnp.dtype(dtype).itemsize

    # Pre-transpose (tiny) so the in-kernel MLP is two lane-dense row matmuls.
    w1t = jnp.transpose(w1).astype(jnp.float32)   # (C, Ch)
    w2t = jnp.transpose(w2).astype(jnp.float32)   # (Ch, C)

    # --- batch tiling -------------------------------------------------------
    # Bound the running-max slab (b_tile*C <= 256 rows -> <= ~32 live vregs in
    # the fold loop) and prefer >= 2 "parallel" batch grid steps (v7x has two
    # TensorCores; on v5e/v6e this costs nothing).
    b_cap = max(1, 256 // C)
    b_tile = 1
    for bt in range(1, min(N, b_cap) + 1):
        if N % bt == 0 and (N < 2 or N // bt >= 2):
            b_tile = bt
    nbt = N // b_tile
    # TODO(synk): for N == 1 on v7x the single parallel step leaves one core
    # idle; splitting HW into core-parallel halves would need a combine pass.

    # --- HW (spatial) tiling: size blocks against real VMEM ------------------
    try:
        vmem_cap = int(pltpu.get_tpu_info().vmem_capacity_bytes)
    except Exception:
        vmem_cap = 64 * 1024 * 1024            # conservative: v7x per-TC VMEM
    vmem_limit = min(int(vmem_cap * 0.82), vmem_cap - 8 * 1024 * 1024)

    n_bufs = 3                                 # pl.Buffered(3) on the x spec
    run_bytes = b_tile * C * LANE * itemsize
    reserve = 2 * 1024 * 1024 + run_bytes      # weights / output / scratch / slack
    bytes_per_lane = b_tile * C * itemsize
    per_buf = (vmem_limit - reserve) // n_bufs
    per_buf = max(LANE * bytes_per_lane, min(per_buf, 16 * 1024 * 1024))

    hw_lane = ((HW + LANE - 1) // LANE) * LANE          # lane-aligned cover of HW
    hw_tile = (per_buf // bytes_per_lane) // LANE * LANE
    hw_tile = max(LANE, min(hw_tile, hw_lane))
    n_hw = (HW + hw_tile - 1) // hw_tile
    mask_needed = (n_hw * hw_tile != HW)                # mask ragged tail in-kernel

    x_flat = x_nchw.reshape(N, C, HW)                   # free reshape, no HBM copy
    kernel = _make_ca_kernel(HW, hw_tile, mask_needed)
    x_index = lambda b, h: (b, 0, h)

    def run(x_spec):
        return pl.pallas_call(
            kernel,
            out_shape=jax.ShapeDtypeStruct((nbt, b_tile, C), dtype),
            grid_spec=pltpu.PrefetchScalarGridSpec(
                num_scalar_prefetch=0,
                grid=(nbt, n_hw),
                in_specs=[
                    x_spec,
                    pl.BlockSpec((C, Ch), lambda b, h: (0, 0)),
                    pl.BlockSpec((Ch, C), lambda b, h: (0, 0)),
                ],
                out_specs=pl.BlockSpec((1, b_tile, C), lambda b, h: (b, 0, 0)),
                scratch_shapes=[pltpu.VMEM((b_tile, C, LANE), dtype)],
            ),
            compiler_params=pltpu.CompilerParams(
                dimension_semantics=("parallel", "arbitrary"),
                vmem_limit_bytes=vmem_limit,
            ),
        )(x_flat, w1t, w2t)

    try:
        # 3-deep pipeline: compute per tile is near zero, hide DMA issue latency.
        out = run(pl.BlockSpec((b_tile, C, hw_tile), x_index,
                               pipeline_mode=pl.Buffered(3)))
    except Exception:
        # Fallback: default double-buffered pipeline.
        out = run(pl.BlockSpec((b_tile, C, hw_tile), x_index))

    return out.reshape(N, C, 1, 1)


def ca_reference(x_nchw, w1, w2):
    pooled = jnp.max(x_nchw.reshape(*x_nchw.shape[:2], -1), axis=-1)   # (N, C)
    h = jnp.maximum(pooled @ w1.T, 0.0)                                # (N, Ch)
    out = jax.nn.sigmoid(h @ w2.T)                                     # (N, C)
    return out.reshape(*out.shape, 1, 1)


if __name__ == "__main__":
    key = jax.random.PRNGKey(0)
    k_x, k_w1, k_w2 = jax.random.split(key, 3)

    N, C, H, W = 2, 64, 16, 16          # in_planes=64 so in_planes//16 = 4
    Ch = C // 16

    x = jax.random.normal(k_x, (N, C, H, W), dtype=jnp.float32)
    # deterministic synthetic weights (Conv2d 1x1, bias=False)
    w1 = jax.random.normal(k_w1, (Ch, C), dtype=jnp.float32) * 0.1
    w2 = jax.random.normal(k_w2, (C, Ch), dtype=jnp.float32) * 0.1

    y = ca_forward(x, w1, w2)
    jax.block_until_ready(y)

    y_ref = ca_reference(x, w1, w2)
    assert y.shape == (N, C, 1, 1)
    assert jnp.allclose(y, y_ref, atol=1e-5, rtol=1e-5)

    print("KERNEL_OK")
</pallas_src>

<mosaic_0001>
module attributes {stable_mosaic.version = 11 : i64} {
  func.func @ca_kernel(%arg0: i32, %arg1: i32, %arg2: memref<1x64x256xf32, #tpu.memory_space<vmem>>, %arg3: memref<64x4xf32, #tpu.memory_space<vmem>>, %arg4: memref<4x64xf32, #tpu.memory_space<vmem>>, %arg5: memref<1x1x64xf32, #tpu.memory_space<vmem>>, %arg6: memref<1x64x128xf32, #tpu.memory_space<vmem>>) attributes {dimension_semantics = [#tpu.dimension_semantics<parallel>, #tpu.dimension_semantics<arbitrary>], iteration_bounds = array<i64: 2, 1>, scalar_prefetch = 0 : i64, scratch_operands = 1 : i64, tpu.core_type = #tpu.core_type<tc>, window_params = [{transform_indices = @transform_0, window_bounds = array<i64: 1, 64, 256>}, {pipeline_mode = #tpu.pipeline_mode<synchronous>, transform_indices = @transform_1, window_bounds = array<i64: 64, 4>}, {pipeline_mode = #tpu.pipeline_mode<synchronous>, transform_indices = @transform_2, window_bounds = array<i64: 4, 64>}, {transform_indices = @transform_3, window_bounds = array<i64: 1, 1, 64>}]} {
    %c0_i32 = arith.constant 0 : i32
    %0 = arith.cmpi eq, %arg1, %c0_i32 : i32
    %1 = arith.extui %0 : i1 to i32
    %c0_i32_0 = arith.constant 0 : i32
    %2 = arith.cmpi ne, %1, %c0_i32_0 : i32
    scf.if %2 {
      %cst = arith.constant 0xFF800000 : f32
      %10 = vector.broadcast %cst : f32 to vector<1x64x128xf32>
      %c0_10 = arith.constant 0 : index
      %c0_11 = arith.constant 0 : index
      %c0_12 = arith.constant 0 : index
      %11 = vector.load %arg6[%c0_10, %c0_11, %c0_12] : memref<1x64x128xf32, #tpu.memory_space<vmem>>, vector<1x64x128xf32>
      tpu.vector_store %arg6[%c0_10, %c0_11, %c0_12], %10 {strides = array<i32>} : memref<1x64x128xf32, #tpu.memory_space<vmem>>, vector<1x64x128xf32>,
    } else {
    }
    %c0 = arith.constant 0 : index
    %c0_1 = arith.constant 0 : index
    %c0_2 = arith.constant 0 : index
    %3 = vector.load %arg6[%c0, %c0_1, %c0_2] : memref<1x64x128xf32, #tpu.memory_space<vmem>>, vector<1x64x128xf32>
    %c0_i32_3 = arith.constant 0 : i32
    %c2_i32 = arith.constant 2 : i32
    %4 = arith.addi %c0_i32_3, %c2_i32 : i32
    %c1_i32 = arith.constant 1 : i32
    %5 = scf.for %arg7 = %c0_i32_3 to %4 step %c1_i32 iter_args(%arg8 = %3) -> (vector<1x64x128xf32>)  : i32 {
      %c128_i32 = arith.constant 128 : i32
      %10 = arith.muli %arg7, %c128_i32 : i32
      %11 = tpu.assume_multiple %10, 128 : i32
      %c0_10 = arith.constant 0 : index
      %c0_11 = arith.constant 0 : index
      %12 = arith.index_cast %11 : i32 to index
      %13 = vector.load %arg2[%c0_10, %c0_11, %12] : memref<1x64x256xf32, #tpu.memory_space<vmem>>, vector<1x64x128xf32>
      %14 = arith.maximumf %arg8, %13 : vector<1x64x128xf32>
      scf.yield %14 : vector<1x64x128xf32>
    }
    %c2_i32_4 = arith.constant 2 : i32
    %c0_5 = arith.constant 0 : index
    %c0_6 = arith.constant 0 : index
    %c0_7 = arith.constant 0 : index
    %6 = vector.load %arg6[%c0_5, %c0_6, %c0_7] : memref<1x64x128xf32, #tpu.memory_space<vmem>>, vector<1x64x128xf32>
    tpu.vector_store %arg6[%c0_5, %c0_6, %c0_7], %5 {strides = array<i32>} : memref<1x64x128xf32, #tpu.memory_space<vmem>>, vector<1x64x128xf32>,
    %c0_i32_8 = arith.constant 0 : i32
    %7 = arith.cmpi eq, %arg1, %c0_i32_8 : i32
    %8 = arith.extui %7 : i1 to i32
    %c0_i32_9 = arith.constant 0 : i32
    %9 = arith.cmpi ne, %8, %c0_i32_9 : i32
    scf.if %9 {
      %c0_10 = arith.constant 0 : index
      %c0_11 = arith.constant 0 : index
      %c0_12 = arith.constant 0 : index
      %10 = vector.load %arg6[%c0_10, %c0_11, %c0_12] : memref<1x64x128xf32, #tpu.memory_space<vmem>>, vector<1x64x128xf32>
      %cst = arith.constant dense<0xFF800000> : vector<1x64xf32>
      %11 = vector.multi_reduction <maximumf>, %10, %cst [2] : vector<1x64x128xf32> to vector<1x64xf32>
      %c0_13 = arith.constant 0 : index
      %c0_14 = arith.constant 0 : index
      %12 = vector.load %arg3[%c0_13, %c0_14] : memref<64x4xf32, #tpu.memory_space<vmem>>, vector<64x4xf32>
      %cst_15 = arith.constant dense<0.000000e+00> : vector<1x4xf32>
      %13 = tpu.matmul %11, %12, %cst_15 {dimension_numbers = #tpu.dot_dimension_numbers<[1], [0], [0], [1], [0, 0, 1, 1], [], []>} : vector<1x64xf32>, vector<64x4xf32>, vector<1x4xf32> -> vector<1x4xf32>
      %cst_16 = arith.constant 0.000000e+00 : f32
      %14 = vector.broadcast %cst_16 : f32 to vector<1x4xf32>
      %15 = arith.maximumf %13, %14 : vector<1x4xf32>
      %c0_17 = arith.constant 0 : index
      %c0_18 = arith.constant 0 : index
      %16 = vector.load %arg4[%c0_17, %c0_18] : memref<4x64xf32, #tpu.memory_space<vmem>>, vector<4x64xf32>
      %cst_19 = arith.constant dense<0.000000e+00> : vector<1x64xf32>
      %17 = tpu.matmul %15, %16, %cst_19 {dimension_numbers = #tpu.dot_dimension_numbers<[1], [0], [0], [1], [0, 0, 1, 1], [], []>} : vector<1x4xf32>, vector<4x64xf32>, vector<1x64xf32> -> vector<1x64xf32>
      %18 = arith.negf %17 : vector<1x64xf32>
      %19 = math.exp %18 : vector<1x64xf32>
      %cst_20 = arith.constant 1.000000e+00 : f32
      %20 = vector.broadcast %cst_20 : f32 to vector<1x64xf32>
      %21 = arith.addf %20, %19 : vector<1x64xf32>
      %22 = arith.divf %20, %21 : vector<1x64xf32>
      %c0_21 = arith.constant 0 : index
      %c0_22 = arith.constant 0 : index
      %c0_23 = arith.constant 0 : index
      %23 = vector.load %arg5[%c0_21, %c0_22, %c0_23] : memref<1x1x64xf32, #tpu.memory_space<vmem>>, vector<1x1x64xf32>
      %24 = vector.shape_cast %23 : vector<1x1x64xf32> to vector<1x64xf32>
      %25 = vector.shape_cast %22 : vector<1x64xf32> to vector<1x1x64xf32>
      tpu.vector_store %arg5[%c0_21, %c0_22, %c0_23], %25 {strides = array<i32>} : memref<1x1x64xf32, #tpu.memory_space<vmem>>, vector<1x1x64xf32>,
    } else {
    }
    return
  }
  func.func @transform_0(%arg0: i32, %arg1: i32) -> (i32, i32, i32) {
    %c0_i32 = arith.constant 0 : i32
    %c0_i32_0 = arith.constant 0 : i32
    return %arg0, %c0_i32, %arg1 : i32, i32, i32
  }
  func.func @transform_1(%arg0: i32, %arg1: i32) -> (i32, i32) {
    %c0_i32 = arith.constant 0 : i32
    %c0_i32_0 = arith.constant 0 : i32
    %c0_i32_1 = arith.constant 0 : i32
    return %c0_i32, %c0_i32_0 : i32, i32
  }
  func.func @transform_2(%arg0: i32, %arg1: i32) -> (i32, i32) {
    %c0_i32 = arith.constant 0 : i32
    %c0_i32_0 = arith.constant 0 : i32
    %c0_i32_1 = arith.constant 0 : i32
    return %c0_i32, %c0_i32_0 : i32, i32
  }
  func.func @transform_3(%arg0: i32, %arg1: i32) -> (i32, i32, i32) {
    %c0_i32 = arith.constant 0 : i32
    %c0_i32_0 = arith.constant 0 : i32
    %c0_i32_1 = arith.constant 0 : i32
    return %arg0, %c0_i32, %c0_i32_0 : i32, i32, i32
  }
}

</mosaic_0001>

<bundles_post_ra>
// kernel: tpu_custom_call.1
= control target key start
LH: loop header
LB: loop body
LE: loop exit
PB: predicated region body
PF: predicated region fallthrough
CT: control target
= control target key end

     0   :  { %8 = vsyncpa [#allocation4], 0  ;;  %s1070_s0 = inlined_call_operand.hbm [shape: f32[2,64,256], index: 0, kind: input, shape index: {}]   ;;  %s1071_s1 = inlined_call_operand.vmem [shape: f32[64,4], index: 1, kind: input, shape index: {}]   ;;  %s1072_s2 = inlined_call_operand.vmem [shape: f32[4,64], index: 2, kind: input, shape index: {}]   ;;  %s1073_s3 = inlined_call_operand.hbm [shape: f32[2,1,64], index: 3, kind: output, shape index: {}]  }
   0x1   :  { %10 = vsyncpa [#allocation4 + $0x1], 0 }
   0x2   :  { %11 = vsyncpa [#allocation5], 0 }
   0x3   :  { %13 = vsyncpa [#allocation5 + $0x1], 0  ;;  %s906_s12 = smov 0   ;;  %s908_s13 = smov 0  }
   0x4   :  { %s910_s14 = smov 0   ;;  %s912_s15 = smov 0  }
   0x5   :  { %s914_s16 = smov 0   ;;  %s916_s17 = smov 0  }
   0x6 LB: > { %s539_s18 = sadd.s32 4294967295, %s846_s17   ;;  %s540_s19 = sadd.s32 4294967294, %s846_s17   ;;  %s846_s17 = sphi %s916_s17, %s19_s17   ;;  %s842_s16 = sphi %s914_s16, %s1082_s16   ;;  %s838_s15 = sphi %s912_s15, %s1081_s15   ;;  %s834_s14 = sphi %s910_s14, %s1080_s14   ;;  %s830_s13 = sphi %s908_s13, %s1079_s13   ;;  %s826_s12 = sphi %s906_s12, %s1078_s12  }
   0x7   : > { %s31_s20 = sadd.s32 1, %s842_s16  ;;  %s40_s21 = sadd.s32 1, %s834_s14 }
   0x8   : > { %p33_p0 = scmp.ge.s32.totalorder %s31_s20, 2  ;;  %p47_p1 = scmp.ne.s32.totalorder %s834_s14, %s830_s13 }
   0x9   : > { %p48_p2 = scmp.eq.s32.totalorder %s846_s17, 0  ;;  %p53_p3 = scmp.ne.s32.totalorder %s830_s13, %s826_s12 }
   0xa   : > { %s1084_s20 = smov (%p33_p0, %s31_s20), 0  ;;  %p54_p5 = scmp.eq.s32.totalorder %s539_s18, 0 }
   0xb   : > { %p947_p4 = por %p48_p2, %p47_p1  ;;  %s35_s23 = ssub.s32 %s842_s16, %s1084_s20 }
   0xc   : > { %p119_p6 = scmp.eq.s32.totalorder %s539_s18, 1  ;;  %p38_p7 = scmp.eq.s32.totalorder %s35_s23, 0 }
   0xd   : > { %p953_p8 = por %p54_p5, %p53_p3  ;;  %p125_p10 = scmp.eq.s32.totalorder %s540_s19, 1 }
   0xe   : > { %p957_p9 = por %p119_p6, %p47_p1  ;;  %p542_p12 = scmp.ge.s32.totalorder %s846_s17, 2 }
   0xf   : > { %s962_s26 = scalar_select %p38_p7, %s834_s14, %s40_s21  }
  0x10   : > { %p964_p11 = por %p125_p10, %p53_p3  ;;  %p569_p13 = scmp.lt.s32.totalorder %s846_s17, 2 }
  0x11   : > { %s151_s28 = sand.u32 1, %s834_s14   ;;  %s556_s30 = sshll.u32 %s842_s16, 7 }
  0x12   : > { %s543_s29 = sshll.u32 %s151_s28, 7  ;;  %s162_s6 = scalar_lea.hbm %s1070_s0, %s556_s30 }
  0x13   : > { %s155_s7 = scalar_lea.vmem [#allocation3], %s543_s29  ;;  %s163_s9 = sshll.u32 %s162_s6, 4  ;;  %s164_s9 = int_to_ptr.hbm [resolvable:$true] %s163_s9 }
  0x14   : > { %s165_s8 = sshll.u32 %s155_s7, 4  ;;  %p562_p0 = pnand %p569_p13, %p947_p4  ;;  %s166_s8 = int_to_ptr.vmem [resolvable:$true] %s165_s8 }
  0x15   : > { %p546_p1 = scmp.ge.s32.totalorder %s846_s17, 1  ;;  %s152_s10 = scalar_lea.sflag [#allocation4], %s151_s28 }
  0x16   : > { %s884_s11 = smov 256   ;;  %s885_s18 = smov 16  }
  0x17   : > { %564 = dma.hbm_to_vmem [thread:$0]  (!%p562_p0), %s164_s9, 2048, %s166_s8, %s152_s10, %s884_s11, %s884_s11, %s885_s18  }
  0x18   : > { %p173_p2 = scmp.lt.s32.totalorder %s846_s17, 3 }
  0x1a   : > { %p174_p3 = pnand %p546_p1, %p173_p2 }
  0x1b   : > { %s980_s19 = sand.u32 (!%p174_p3), 1, %s830_s13  }
  0x1c   : > { %177 = sbr.rel (%p174_p3) target bundleno = 464 (0x1d0), region = 32  ;;  %s547_s21 = sshll.u32 (!%p174_p3), %s980_s19, 7 }
  0x1d   : > { %s180_s23 = scalar_lea.sflag (!%p174_p3), [#allocation4], %s980_s19  ;;  %s984_s29 = scalar_lea.vmem (!%p174_p3), [#allocation3], %s547_s21 }
  0x21   : > { %817 = dma.done.wait (%p953_p8), %s180_s23, 2048  }
  0x22   : > { %819 = vsyncadd (%p953_p8), %s180_s23, 4294965248  ;;  %s205_s22 = scalar_lea.vmem [#allocation6], %s980_s19  ;;  %v848_v0 = vmov -inf   ;;  %v852_v1 = vmov -inf   ;;  %v856_v2 = vmov -inf   ;;  %v860_v3 = vmov -inf  }
  0x23   : > { %v864_v4 = vmov -inf   ;;  %v868_v5 = vmov -inf   ;;  %v872_v6 = vmov -inf   ;;  %v876_v7 = vmov -inf   ;;  %s991_s28 = smov 0  }
  0x24 LB: >> { %s548_s24 = sshll.u32 %s882_s28, 7  ;;  %s232_s28 = sadd.s32 1, %s882_s28   ;;  %s882_s28 = sphi %s991_s28, %s232_s28   ;;  %v878_v7 = vphi %v876_v7, %v877_v7   ;;  %v874_v6 = vphi %v872_v6, %v873_v6   ;;  %v870_v5 = vphi %v868_v5, %v869_v5   ;;  %v866_v4 = vphi %v864_v4, %v865_v4   ;;  %v862_v3 = vphi %v860_v3, %v861_v3   ;;  %v858_v2 = vphi %v856_v2, %v857_v2   ;;  %v854_v1 = vphi %v852_v1, %v853_v1   ;;  %v850_v0 = vphi %v848_v0, %v849_v0  }
  0x25   : >> { %s242_s30 = sshra.s32 %s548_s24, 7  ;;  %p229_p4 = scmp.ge.s32.totalorder %s232_s28, 2  }
  0x26   : >> { %s549_s4 = sshll.u32 %s242_s30, 3  ;;  %v304_v24 = vld [vmem:[%s1071_s1 + $0x38] sm:$0xff] (%p229_p4)  ;;  %v303_v25 = vld [vmem:[%s1071_s1 + $0x30] sm:$0xff] (%p229_p4)  ;;  %v302_v26 = vld [vmem:[%s1071_s1 + $0x28] sm:$0xff] (%p229_p4)  ;;  %v313_v32 = vlaneseq (%p229_p4)  ;;  %vm318_vm0 = vcmask (%p229_p4), 130112   ;;  %vm322_vm1 = vcmask (%p229_p4), 195712   ;;  %s427_s11 = scalar_lea.hbm (%p229_p4), %s1073_s3, %s838_s15 }
  0x27   : >> { %s245_s5 = scalar_lea.vmem %s984_s29, %s549_s4 [#allocation3]  ;;  %355 = vmatpush.msra.mxu0 (%p229_p4), %v304_v24  ;;  %v301_v27 = vld [vmem:[%s1071_s1 + $0x20] sm:$0xff] (%p229_p4)  ;;  %v300_v28 = vld [vmem:[%s1071_s1 + $0x18] sm:$0xff] (%p229_p4)  ;;  %v299_v29 = vld [vmem:[%s1071_s1 + $0x10] sm:$0xff] (%p229_p4)  ;;  %vm326_vm2 = vcmask (%p229_p4), 261312   ;;  %vm330_vm3 = vcmask (%p229_p4), 326912   ;;  %vm334_vm4 = vcmask (%p229_p4), 392512  }
  0x28   : >> { %v246_v8 = vld [vmem:[%s245_s5] sm:$0xff]  ;;  %v247_v9 = vld [vmem:[%s245_s5 + $0x10] sm:$0xff]  ;;  %v298_v30 = vld [vmem:[%s1071_s1 + $0x8] sm:$0xff] (%p229_p4)  ;;  %v314_v36 = vand.u32 (%p229_p4), 127, %v313_v32  ;;  %vm338_vm5 = vcmask (%p229_p4), 458112   ;;  %vm342_vm6 = vcmask (%p229_p4), 523712  }
  0x29   : >> { %v248_v10 = vld [vmem:[%s245_s5 + $0x20] sm:$0xff]  ;;  %v249_v11 = vld [vmem:[%s245_s5 + $0x30] sm:$0xff]  ;;  %v254_v14 = vmax.f32 %v878_v7, %v246_v8   ;;  %v255_v15 = vmax.f32 %v874_v6, %v247_v9   ;;  %356 = vmatpush.msra.mxu0 (%p229_p4), %v303_v25  ;;  %vm344_vm7 = vcmask (%p229_p4), 523264   ;;  %vm373_vm8 = vcmask (%p229_p4), 1043456   ;;  %s429_s18 = sshll.u32 (%p229_p4), %s205_s22, 4  ;;  %s431_s21 = sshll.u32 (%p229_p4), %s427_s11, 4  ;;  %s430_s18 = int_to_ptr.vmem [resolvable:$true] %s429_s18  ;;  %s432_s21 = int_to_ptr.hbm [resolvable:$true] %s431_s21 }
  0x2a   : >> { %v250_v12 = vld [vmem:[%s245_s5 + $0x40] sm:$0xff]  ;;  %v251_v13 = vld [vmem:[%s245_s5 + $0x50] sm:$0xff]  ;;  %v256_v16 = vmax.f32 %v870_v5, %v248_v10   ;;  %v257_v19 = vmax.f32 %v866_v4, %v249_v11   ;;  %231 = sbr.rel (!%p229_p4) target bundleno = 36 (0x24), region = 93  ;;  %v316_v37 = vadd.s32 (%p229_p4), 4294967288, %v314_v36  ;;  %v324_v38 = vadd.s32 (%p229_p4), 4294967272, %v314_v36  ;;  %s419_s15 = scalar_lea.sflag (%p229_p4), [#allocation5], %s980_s19 }
  0x2b   : >> { %v252_v17 = vld [vmem:[%s245_s5 + $0x60] sm:$0xff]  ;;  %v253_v18 = vld [vmem:[%s245_s5 + $0x70] sm:$0xff]  ;;  %v258_v20 = vmax.f32 %v862_v3, %v250_v12   ;;  %v259_v21 = vmax.f32 %v858_v2, %v251_v13   ;;  %v873_v6 = vmov %v255_v15   ;;  %v877_v7 = vmov %v254_v14   ;;  %281 = vmax.xlane.f32.xlu0 (%p229_p4), %v254_v14  ;;  %357 = vmatpush.msra.mxu0 (%p229_p4), %v302_v26  ;;  %s742_s23 = sshra.s32 (%p229_p4), %s432_s21, 4  ;;  %s748_s30 = scalar_lea.hbm (%p229_p4), %s1073_s3, 2  ;;  %s743_s23 = int_to_ptr.hbm [resolvable:$true] %s742_s23 }
  0x2c   : >> { %v260_v22 = vmax.f32 %v854_v1, %v252_v17   ;;  %v261_v23 = vmax.f32 %v850_v0, %v253_v18   ;;  %v865_v4 = vmov %v257_v19   ;;  %v869_v5 = vmov %v256_v16   ;;  %285 = vmax.xlane.f32.xlu1 (%p229_p4), %v256_v16  ;;  %v297_v31 = vld [vmem:[%s1071_s1] sm:$0xff] (%p229_p4)  ;;  %s744_s29 = scalar_lea.hbm (%p229_p4), %s743_s23, 1  ;;  %p749_p8 = scmp.lt.s32.totalorder (%p229_p4), %s743_s23, %s1073_s3 }
  0x2d   : >> { %v857_v2 = vmov %v259_v21   ;;  %v861_v3 = vmov %v258_v20   ;;  %289 = vmax.xlane.f32.xlu2 (%p229_p4), %v258_v20  ;;  %358 = vmatpush.msra.mxu0 (%p229_p4), %v301_v27  ;;  %v320_v39 = vadd.s32 (%p229_p4), 4294967280, %v314_v36  ;;  %v328_v40 = vadd.s32 (%p229_p4), 4294967264, %v314_v36  ;;  %p745_p5 = scmp.ne.s32.totalorder (%p229_p4), %s743_s23, %s744_s29  ;;  %p750_p10 = scmp.lt.s32.totalorder (%p229_p4), %s748_s30, %s744_s29 }
  0x2e   : >> { %v849_v0 = vmov %v261_v23   ;;  %v853_v1 = vmov %v260_v22   ;;  %v332_v47 = vadd.s32 (%p229_p4), 4294967256, %v314_v36  ;;  %v336_v53 = vadd.s32 (%p229_p4), 4294967248, %v314_v36 }
  0x2f   : > { %359 = vmatpush.msra.mxu0 %v300_v28  ;;  %v340_v54 = vadd.s32 4294967240, %v314_v36  ;;  %v368_v0 = vld [vmem:[%s1072_s2] sm:$0xf]  ;;  %vm369_vm9 = vcmask 31744   ;;  %vm416_vm13 = vcmask 516096   ;;  %p746_p6 = pnand %p745_p5, %p957_p9  ;;  %p751_p13 = por %p750_p10, %p749_p8 }
  0x30   : > { %551 = vmatpush.msk.msra.mxu1 %vm373_vm8, %v368_v0 }
  0x31   : > { %360 = vmatpush.msra.mxu0 %v299_v29  ;;  %p747_p7 = pneg %p746_p6 }
  0x33   : > { %283 = vmax.xlane.f32.xlu0 %v255_v15  ;;  %361 = vmatpush.msra.mxu0 %v298_v30  ;;  %p752_p0 = pnand %p751_p13, %p747_p7 }
  0x34   : > { %287 = vmax.xlane.f32.xlu1 %v257_v19 }
  0x35   : > { %291 = vmax.xlane.f32.xlu2 %v259_v21  ;;  %362 = vmatpush.msra.mxu0 %v297_v31 }
  0x3b   : > { %293 = vmax.xlane.f32.xlu0 %v260_v22 }
  0x3c   : > { %295 = vmax.xlane.f32.xlu1 %v261_v23 }
  0x9e   : > { %v282_v33 = vpop.xlane.xlu0 %281 }
  0x9f   : > { %v286_v34 = vpop.xlane.xlu1 %285  ;;  %v315_v43 = vperm.slane %v282_v33, %v314_v36 }
  0xa0   : > { %v290_v35 = vpop.xlane.xlu2 %289  ;;  %v321_v46 = vperm.slane %v286_v34, %v320_v39 }
  0xa1   : > { %v329_v51 = vperm.slane %v290_v35, %v328_v40 }
  0xa6   : > { %v284_v41 = vpop.xlane.xlu0 %283 }
  0xa7   : > { %v288_v42 = vpop.xlane.xlu1 %287  ;;  %v317_v44 = vperm.slane %v284_v41, %v316_v37 }
  0xa8   : > { %v325_v45 = vperm.slane %v288_v42, %v324_v38  ;;  %v292_v49 = vpop.xlane.xlu2 %291 }
  0xa9   : > { %v319_v48 = vsel %vm318_vm0, %v317_v44, %v315_v43  ;;  %v333_v55 = vperm.slane %v292_v49, %v332_v47 }
  0xaa   : > { %v323_v50 = vsel %vm322_vm1, %v321_v46, %v319_v48 }
  0xab   : > { %v327_v52 = vsel %vm326_vm2, %v325_v45, %v323_v50 }
  0xac   : > { %v331_v56 = vsel %vm330_vm3, %v329_v51, %v327_v52 }
  0xad   : > { %v335_v61 = vsel %vm334_vm4, %v333_v55, %v331_v56 }
  0xae   : > { %v294_v57 = vpop.xlane.xlu0 %293 }
  0xaf   : > { %v296_v58 = vpop.xlane.xlu1 %295  ;;  %v337_v59 = vperm.slane %v294_v57, %v336_v53 }
  0xb0   : > { %v341_v60 = vperm.slane %v296_v58, %v340_v54 }
  0xb1   : > { %v339_v62 = vsel %vm338_vm5, %v337_v59, %v335_v61 }
  0xb2   : > { %v343_v63 = vsel %vm342_vm6, %v341_v60, %v339_v62 }
  0xb3   : > { %550 = vmatmul.msk.f32.vlgmr.msra.gmra.mxu0 %vm344_vm7, %v343_v63 }
 0x130   : > { %v364_v1 = vpop.f32.mrf.mxu0 }
 0x131   : > { %v367_v2 = vmax.f32 %v364_v1, 0.0 }
 0x133   : > { %552 = vmatmul.msk.f32.vlgmr.msra.gmra.mxu1 %vm369_vm9, %v367_v2 }
 0x1b0   : > { %v394_v3 = vpop.f32.mrf.mxu1 }
 0x1b1   : > { %v553_v4 = vmul.f32 -1.442695, %v394_v3 }
 0x1b3   : > { %694 = vpow2.f32 %v553_v4 }
 0x1b9   : > { %v695_v5 = vpop.eup %694 }
 0x1ba   : > { %v400_v6 = vadd.f32 1.0, %v695_v5 }
 0x1bc   : > { %696 = vrcp.f32 %v400_v6  ;;  %v412_v10 = vand.u32 2147483648, %v400_v6  ;;  %v410_v12 = vand.u32 2147483647, %v400_v6  ;;  %vm406_vm11 = vweird.f32 %v400_v6 }
 0x1be   : > { %v413_v14 = vor.u32 1.1754944e-38, %v412_v10  ;;  %vm411_vm14 = vcmp.eq.f32.partialorder %v410_v12, 8.507059e+37 }
 0x1c2   : > { %v697_v7 = vpop.eup %696 }
 0x1c3   : > { %v402_v8 = vmul.f32 %v697_v7, %v400_v6  ;;  %vm407_vm10 = vweird.f32 %v697_v7 }
 0x1c4   : > { %vm408_vm12 = vmor %vm406_vm11, %vm407_vm10 }
 0x1c5   : > { %v403_v9 = vsub.f32 1.0, %v402_v8 }
 0x1c7   : > { %v404_v11 = vmul.f32 %v697_v7, %v403_v9 }
 0x1c9   : > { %v405_v13 = vadd.f32 %v697_v7, %v404_v11 }
 0x1cb   : > { %v409_v15 = vsel %vm408_vm12, %v697_v7, %v405_v13 }
 0x1cc   : > { %v414_v16 = vsel %vm411_vm14, %v413_v14, %v409_v15 }
 0x1cd   : > { %417 = vst.msk [vmem:[%s205_s22] sm:$0x1] %vm416_vm13, %v414_v16 }
 0x1ce   : > { %755 = shalt.err (!%p752_p0)
}
 0x1cf   : > { %559 = dma.vmem_to_hbm [thread:$0]  (%p957_p9), %s430_s18, 16, %s432_s21, %s419_s15  }
 0x1d0 PF: > { %s443_s19 = sand.u32 1, %s826_s12   ;;  %p566_p1 = pnand %p542_p12, %p964_p11 }
 0x1d1   : > { %s444_s22 = scalar_lea.sflag [#allocation5], %s443_s19 }
 0x1d2   : > { %p567_p2 = pneg %p566_p1 }
 0x1d4   : > { %821 = dma.done.wait (%p567_p2), %s444_s22, 16  }
 0x1d5   : > { %823 = vsyncadd (%p567_p2), %s444_s22, 4294967280  ;;  %s19_s17 = sadd.s32 1, %s846_s17   ;;  %s1078_s12 = smov %s830_s13 }
 0x1d6   : > { %p16_p3 = scmp.ge.s32.totalorder %s19_s17, 4   ;;  %s1079_s13 = smov %s834_s14 }
 0x1d7   : > { %s1080_s14 = smov %s962_s26  ;;  %s1081_s15 = smov %s842_s16 }
 0x1d8   : > { %s1082_s16 = smov %s1084_s20  ;;  %18 = sbr.rel (!%p16_p3) target bundleno = 6 (0x6), region = 104 }
 0x1dd   :  { %449 = vsyncpa [#allocation4], 1 }
 0x1de   :  { %451 = vsyncpa [#allocation4 + $0x1], 1 }
 0x1df   :  { %452 = vsyncpa [#allocation5], 1 }
 0x1e0   :  { %454 = vsyncpa [#allocation5 + $0x1], 1 }

</bundles_post_ra>
